<compile_context>
chip_gen: v7x
topology: tpu7x:2x2x1
jax: 0.10.0
libtpu: 0.0.40
codegen_flags: <defaults>
</compile_context>

<pallas_src>
import functools

import jax
import jax.numpy as jnp
from jax.experimental import pallas as pl
from jax.experimental.pallas import tpu as pltpu


def _value_net_kernel(x_ref,
                      w1_ref, b1_ref,
                      w2_ref, b2_ref,
                      w3_ref, b3_ref,
                      w4_ref, b4_ref,
                      o_ref):
    """Full ValueNet forward for one batch tile.

    x_ref : (TB, n_states)  (bf16)
    wK_ref: (in, out) for layers 1-3, (1, hidden) for layer 4  (bf16)
    bK_ref: (1, out) f32, b4 is (1, 1) f32
    o_ref : (1, 1, TB) f32  -- lane-dense row of values for this tile
    """
    f32 = jnp.float32
    x = x_ref[...]                                                   # bf16 tile

    h = jnp.dot(x, w1_ref[...], preferred_element_type=f32) + b1_ref[...]
    h = jnp.maximum(h, 0.0)                                          # ReLU(linear1), f32

    h = jnp.dot(h.astype(w2_ref.dtype), w2_ref[...],
                preferred_element_type=f32) + b2_ref[...]
    h = jnp.maximum(h, 0.0)                                          # ReLU(linear2), f32

    h = jnp.dot(h.astype(w3_ref.dtype), w3_ref[...],
                preferred_element_type=f32) + b3_ref[...]
    h = jnp.maximum(h, 0.0)                                          # ReLU(linear3), f32

    # linear4 (hidden -> 1): contract the hidden axis of both operands so the
    # result comes out as a lane-dense (1, TB) row (same pattern as q @ k^T in
    # flash attention), avoiding a masked width-1 column store.
    v_row = jnp.einsum('oh,bh->ob', w4_ref[...], h.astype(w4_ref.dtype),
                       preferred_element_type=f32) + b4_ref[...]     # (1, TB)
    o_ref[0] = v_row.astype(o_ref.dtype)


def _default_batch_tile(batch):
    """Pick a batch tile: 256-1024 rows preferred, >= 2 grid steps when possible.

    Tiles are multiples of 16 (bf16 sublane packing); fall back to the full
    batch (always legal: block == full array dims) for tiny/odd batches.
    """
    for tb in (512, 256, 1024, 128, 64, 32, 16):
        if batch % tb == 0 and batch // tb >= 2:
            return tb
    return batch


@functools.partial(jax.jit, static_argnames=("batch_tile",))
def value_net_forward(state, params, *, batch_tile=None):
    """state: (B, n_states) -> (B, 1) f32 value."""
    w1, b1, w2, b2, w3, b3, w4, b4 = params
    B, n_states = state.shape
    hidden = w1.shape[1]

    tb = _default_batch_tile(B) if batch_tile is None else batch_tile
    assert B % tb == 0, "batch must be divisible by batch_tile"
    assert tb == B or tb % 16 == 0, \
        "batch_tile must equal B or be a multiple of 16 (sublane/bf16 packing)"
    grid_n = B // tb

    # Cast the activations once in the wrapper to the weight dtype (bf16).
    x = state.astype(w1.dtype)

    # Weights/biases: full-array blocks, same block index every grid step
    # (fetched once, reused across the whole grid).
    def _rep(i):
        return (0, 0)

    w_spec = lambda a: pl.BlockSpec(a.shape, _rep)

    # Advisory cost hint for XLA scheduling around this small custom call.
    wbytes = int(w1.dtype.itemsize)
    flops = 2 * B * (n_states * hidden + 2 * hidden * hidden + hidden)
    bytes_accessed = (
        B * n_states * wbytes                                   # state
        + (n_states * hidden + 2 * hidden * hidden + hidden) * wbytes  # weights
        + (3 * hidden + 1) * 4                                  # f32 biases
        + B * 4                                                 # f32 output
    )

    out = pl.pallas_call(
        _value_net_kernel,
        out_shape=jax.ShapeDtypeStruct((grid_n, 1, tb), jnp.float32),
        grid_spec=pltpu.PrefetchScalarGridSpec(
            num_scalar_prefetch=0,
            grid=(grid_n,),
            in_specs=[
                pl.BlockSpec((tb, n_states), lambda i: (i, 0)),  # state tile
                w_spec(w1), w_spec(b1),
                w_spec(w2), w_spec(b2),
                w_spec(w3), w_spec(b3),
                w_spec(w4), w_spec(b4),
            ],
            # Lane-dense output: one (1, 1, tb) row per grid step.
            out_specs=pl.BlockSpec((1, 1, tb), lambda i: (i, 0, 0)),
        ),
        compiler_params=pltpu.CompilerParams(
            dimension_semantics=("parallel",),
        ),
        cost_estimate=pl.CostEstimate(
            flops=flops, transcendentals=0, bytes_accessed=int(bytes_accessed)),
    )(x, w1, b1, w2, b2, w3, b3, w4, b4)

    return out.reshape(B, 1)


def init_value_net_params(key, n_states, hidden_dim, init_w=0.003):
    """Init mirroring the PyTorch module's shapes/init scheme (f32).

    linear1-3: uniform(-1/sqrt(fan_in), 1/sqrt(fan_in)), weights stored (in, out).
    linear4:   uniform(-init_w, init_w); weight kept in PyTorch (1, hidden)
               layout, bias as (1, 1).
    """
    ks = jax.random.split(key, 8)

    def lin(kw, kb, fan_in, fan_out, bound):
        w = jax.random.uniform(kw, (fan_in, fan_out), jnp.float32, -bound, bound)
        b = jax.random.uniform(kb, (1, fan_out), jnp.float32, -bound, bound)
        return w, b

    w1, b1 = lin(ks[0], ks[1], n_states, hidden_dim, 1.0 / jnp.sqrt(n_states))
    w2, b2 = lin(ks[2], ks[3], hidden_dim, hidden_dim, 1.0 / jnp.sqrt(hidden_dim))
    w3, b3 = lin(ks[4], ks[5], hidden_dim, hidden_dim, 1.0 / jnp.sqrt(hidden_dim))
    w4 = jax.random.uniform(ks[6], (1, hidden_dim), jnp.float32, -init_w, init_w)
    b4 = jax.random.uniform(ks[7], (1, 1), jnp.float32, -init_w, init_w)
    return (w1, b1, w2, b2, w3, b3, w4, b4)


def prepare_params(params):
    """One-time cast: weights -> bf16 (MXU-native), biases stay f32."""
    w1, b1, w2, b2, w3, b3, w4, b4 = params
    bf = jnp.bfloat16
    return (w1.astype(bf), b1, w2.astype(bf), b2,
            w3.astype(bf), b3, w4.astype(bf), b4)


def value_net_reference(state, params):
    """Pure-JAX reference mirroring the kernel's mixed-precision math."""
    w1, b1, w2, b2, w3, b3, w4, b4 = params
    f32 = jnp.float32
    x = state.astype(w1.dtype)
    h = jnp.maximum(jnp.dot(x, w1, preferred_element_type=f32) + b1, 0.0)
    h = jnp.maximum(jnp.dot(h.astype(w2.dtype), w2, preferred_element_type=f32) + b2, 0.0)
    h = jnp.maximum(jnp.dot(h.astype(w3.dtype), w3, preferred_element_type=f32) + b3, 0.0)
    v = jnp.dot(h.astype(w4.dtype), jnp.transpose(w4), preferred_element_type=f32) + b4
    return v


if __name__ == "__main__":
    key = jax.random.PRNGKey(0)
    k_param, k_state = jax.random.split(key)

    # Small shapes consistent with the module: state dim 8, hidden_dim 32.
    # B=32 exercises the batch tiling (tb=16 -> 2 grid steps).
    B, n_states, hidden_dim = 32, 8, 32

    params = prepare_params(
        init_value_net_params(k_param, n_states, hidden_dim, init_w=0.003))
    state = jax.random.normal(k_state, (B, n_states), jnp.float32)

    out = value_net_forward(state, params)
    out = jax.block_until_ready(out)

    ref = value_net_reference(state, params)
    assert out.shape == (B, 1), out.shape
    max_err = jnp.max(jnp.abs(out - ref))
    assert jnp.allclose(out, ref, atol=1e-4, rtol=1e-3), f"max abs err {max_err}"

    print("KERNEL_OK")
</pallas_src>

<mosaic_0001>
module attributes {stable_mosaic.version = 11 : i64} {
  func.func @_value_net_kernel(%arg0: i32, %arg1: memref<16x8xbf16, #tpu.memory_space<vmem>>, %arg2: memref<8x32xbf16, #tpu.memory_space<vmem>>, %arg3: memref<1x32xf32, #tpu.memory_space<vmem>>, %arg4: memref<32x32xbf16, #tpu.memory_space<vmem>>, %arg5: memref<1x32xf32, #tpu.memory_space<vmem>>, %arg6: memref<32x32xbf16, #tpu.memory_space<vmem>>, %arg7: memref<1x32xf32, #tpu.memory_space<vmem>>, %arg8: memref<1x32xbf16, #tpu.memory_space<vmem>>, %arg9: memref<1x1xf32, #tpu.memory_space<vmem>>, %arg10: memref<1x1x16xf32, #tpu.memory_space<vmem>>) attributes {dimension_semantics = [#tpu.dimension_semantics<parallel>], iteration_bounds = array<i64: 2>, scalar_prefetch = 0 : i64, scratch_operands = 0 : i64, tpu.core_type = #tpu.core_type<tc>, window_params = [{transform_indices = @transform_0, window_bounds = array<i64: 16, 8>}, {pipeline_mode = #tpu.pipeline_mode<synchronous>, transform_indices = @transform_1, window_bounds = array<i64: 8, 32>}, {pipeline_mode = #tpu.pipeline_mode<synchronous>, transform_indices = @transform_2, window_bounds = array<i64: 1, 32>}, {pipeline_mode = #tpu.pipeline_mode<synchronous>, transform_indices = @transform_3, window_bounds = array<i64: 32, 32>}, {pipeline_mode = #tpu.pipeline_mode<synchronous>, transform_indices = @transform_4, window_bounds = array<i64: 1, 32>}, {pipeline_mode = #tpu.pipeline_mode<synchronous>, transform_indices = @transform_5, window_bounds = array<i64: 32, 32>}, {pipeline_mode = #tpu.pipeline_mode<synchronous>, transform_indices = @transform_6, window_bounds = array<i64: 1, 32>}, {pipeline_mode = #tpu.pipeline_mode<synchronous>, transform_indices = @transform_7, window_bounds = array<i64: 1, 32>}, {pipeline_mode = #tpu.pipeline_mode<synchronous>, transform_indices = @transform_8, window_bounds = array<i64: 1, 1>}, {transform_indices = @transform_9, window_bounds = array<i64: 1, 1, 16>}]} {
    %c0 = arith.constant 0 : index
    %c0_0 = arith.constant 0 : index
    %0 = vector.load %arg1[%c0, %c0_0] : memref<16x8xbf16, #tpu.memory_space<vmem>>, vector<16x8xbf16>
    %c0_1 = arith.constant 0 : index
    %c0_2 = arith.constant 0 : index
    %1 = vector.load %arg2[%c0_1, %c0_2] : memref<8x32xbf16, #tpu.memory_space<vmem>>, vector<8x32xbf16>
    %cst = arith.constant dense<0.000000e+00> : vector<16x32xf32>
    %2 = tpu.matmul %0, %1, %cst {dimension_numbers = #tpu.dot_dimension_numbers<[1], [0], [0], [1], [0, 0, 1, 1], [], []>} : vector<16x8xbf16>, vector<8x32xbf16>, vector<16x32xf32> -> vector<16x32xf32>
    %c0_3 = arith.constant 0 : index
    %c0_4 = arith.constant 0 : index
    %3 = vector.load %arg3[%c0_3, %c0_4] : memref<1x32xf32, #tpu.memory_space<vmem>>, vector<1x32xf32>
    %4 = vector.broadcast %3 : vector<1x32xf32> to vector<16x32xf32>
    %5 = arith.addf %2, %4 : vector<16x32xf32>
    %cst_5 = arith.constant 0.000000e+00 : f32
    %6 = vector.broadcast %cst_5 : f32 to vector<16x32xf32>
    %7 = arith.maximumf %5, %6 : vector<16x32xf32>
    %8 = arith.truncf %7 : vector<16x32xf32> to vector<16x32xbf16>
    %c0_6 = arith.constant 0 : index
    %c0_7 = arith.constant 0 : index
    %9 = vector.load %arg4[%c0_6, %c0_7] : memref<32x32xbf16, #tpu.memory_space<vmem>>, vector<32x32xbf16>
    %cst_8 = arith.constant dense<0.000000e+00> : vector<16x32xf32>
    %10 = tpu.matmul %8, %9, %cst_8 {dimension_numbers = #tpu.dot_dimension_numbers<[1], [0], [0], [1], [0, 0, 1, 1], [], []>} : vector<16x32xbf16>, vector<32x32xbf16>, vector<16x32xf32> -> vector<16x32xf32>
    %c0_9 = arith.constant 0 : index
    %c0_10 = arith.constant 0 : index
    %11 = vector.load %arg5[%c0_9, %c0_10] : memref<1x32xf32, #tpu.memory_space<vmem>>, vector<1x32xf32>
    %12 = vector.broadcast %11 : vector<1x32xf32> to vector<16x32xf32>
    %13 = arith.addf %10, %12 : vector<16x32xf32>
    %cst_11 = arith.constant 0.000000e+00 : f32
    %14 = vector.broadcast %cst_11 : f32 to vector<16x32xf32>
    %15 = arith.maximumf %13, %14 : vector<16x32xf32>
    %16 = arith.truncf %15 : vector<16x32xf32> to vector<16x32xbf16>
    %c0_12 = arith.constant 0 : index
    %c0_13 = arith.constant 0 : index
    %17 = vector.load %arg6[%c0_12, %c0_13] : memref<32x32xbf16, #tpu.memory_space<vmem>>, vector<32x32xbf16>
    %cst_14 = arith.constant dense<0.000000e+00> : vector<16x32xf32>
    %18 = tpu.matmul %16, %17, %cst_14 {dimension_numbers = #tpu.dot_dimension_numbers<[1], [0], [0], [1], [0, 0, 1, 1], [], []>} : vector<16x32xbf16>, vector<32x32xbf16>, vector<16x32xf32> -> vector<16x32xf32>
    %c0_15 = arith.constant 0 : index
    %c0_16 = arith.constant 0 : index
    %19 = vector.load %arg7[%c0_15, %c0_16] : memref<1x32xf32, #tpu.memory_space<vmem>>, vector<1x32xf32>
    %20 = vector.broadcast %19 : vector<1x32xf32> to vector<16x32xf32>
    %21 = arith.addf %18, %20 : vector<16x32xf32>
    %cst_17 = arith.constant 0.000000e+00 : f32
    %22 = vector.broadcast %cst_17 : f32 to vector<16x32xf32>
    %23 = arith.maximumf %21, %22 : vector<16x32xf32>
    %c0_18 = arith.constant 0 : index
    %c0_19 = arith.constant 0 : index
    %24 = vector.load %arg8[%c0_18, %c0_19] : memref<1x32xbf16, #tpu.memory_space<vmem>>, vector<1x32xbf16>
    %25 = arith.truncf %23 : vector<16x32xf32> to vector<16x32xbf16>
    "tpu.trace_start"() <{level = 10 : i32, message = "oh,bh->ob"}> : () -> ()
    %cst_20 = arith.constant dense<0.000000e+00> : vector<1x16xf32>
    %26 = tpu.matmul %24, %25, %cst_20 {dimension_numbers = #tpu.dot_dimension_numbers<[1], [1], [0], [0], [0, 0, 1, 0], [], []>} : vector<1x32xbf16>, vector<16x32xbf16>, vector<1x16xf32> -> vector<1x16xf32>
    "tpu.trace_stop"() : () -> ()
    %c0_21 = arith.constant 0 : index
    %c0_22 = arith.constant 0 : index
    %27 = vector.load %arg9[%c0_21, %c0_22] : memref<1x1xf32, #tpu.memory_space<vmem>>, vector<1x1xf32>
    %28 = vector.broadcast %27 : vector<1x1xf32> to vector<1x16xf32>
    %29 = arith.addf %26, %28 : vector<1x16xf32>
    %c0_23 = arith.constant 0 : index
    %c0_24 = arith.constant 0 : index
    %c0_25 = arith.constant 0 : index
    %30 = vector.load %arg10[%c0_23, %c0_24, %c0_25] : memref<1x1x16xf32, #tpu.memory_space<vmem>>, vector<1x1x16xf32>
    %31 = vector.shape_cast %30 : vector<1x1x16xf32> to vector<1x16xf32>
    %32 = vector.shape_cast %29 : vector<1x16xf32> to vector<1x1x16xf32>
    tpu.vector_store %arg10[%c0_23, %c0_24, %c0_25], %32 {strides = array<i32>} : memref<1x1x16xf32, #tpu.memory_space<vmem>>, vector<1x1x16xf32>,
    return
  }
  func.func @transform_0(%arg0: i32) -> (i32, i32) {
    %c0_i32 = arith.constant 0 : i32
    %c0_i32_0 = arith.constant 0 : i32
    return %arg0, %c0_i32 : i32, i32
  }
  func.func @transform_1(%arg0: i32) -> (i32, i32) {
    %c0_i32 = arith.constant 0 : i32
    %c0_i32_0 = arith.constant 0 : i32
    %c0_i32_1 = arith.constant 0 : i32
    return %c0_i32, %c0_i32_0 : i32, i32
  }
  func.func @transform_2(%arg0: i32) -> (i32, i32) {
    %c0_i32 = arith.constant 0 : i32
    %c0_i32_0 = arith.constant 0 : i32
    %c0_i32_1 = arith.constant 0 : i32
    return %c0_i32, %c0_i32_0 : i32, i32
  }
  func.func @transform_3(%arg0: i32) -> (i32, i32) {
    %c0_i32 = arith.constant 0 : i32
    %c0_i32_0 = arith.constant 0 : i32
    %c0_i32_1 = arith.constant 0 : i32
    return %c0_i32, %c0_i32_0 : i32, i32
  }
  func.func @transform_4(%arg0: i32) -> (i32, i32) {
    %c0_i32 = arith.constant 0 : i32
    %c0_i32_0 = arith.constant 0 : i32
    %c0_i32_1 = arith.constant 0 : i32
    return %c0_i32, %c0_i32_0 : i32, i32
  }
  func.func @transform_5(%arg0: i32) -> (i32, i32) {
    %c0_i32 = arith.constant 0 : i32
    %c0_i32_0 = arith.constant 0 : i32
    %c0_i32_1 = arith.constant 0 : i32
    return %c0_i32, %c0_i32_0 : i32, i32
  }
  func.func @transform_6(%arg0: i32) -> (i32, i32) {
    %c0_i32 = arith.constant 0 : i32
    %c0_i32_0 = arith.constant 0 : i32
    %c0_i32_1 = arith.constant 0 : i32
    return %c0_i32, %c0_i32_0 : i32, i32
  }
  func.func @transform_7(%arg0: i32) -> (i32, i32) {
    %c0_i32 = arith.constant 0 : i32
    %c0_i32_0 = arith.constant 0 : i32
    %c0_i32_1 = arith.constant 0 : i32
    return %c0_i32, %c0_i32_0 : i32, i32
  }
  func.func @transform_8(%arg0: i32) -> (i32, i32) {
    %c0_i32 = arith.constant 0 : i32
    %c0_i32_0 = arith.constant 0 : i32
    %c0_i32_1 = arith.constant 0 : i32
    return %c0_i32, %c0_i32_0 : i32, i32
  }
  func.func @transform_9(%arg0: i32) -> (i32, i32, i32) {
    %c0_i32 = arith.constant 0 : i32
    %c0_i32_0 = arith.constant 0 : i32
    %c0_i32_1 = arith.constant 0 : i32
    return %arg0, %c0_i32, %c0_i32_0 : i32, i32, i32
  }
}

</mosaic_0001>

<bundles_post_ra>
// kernel: value_net_forward.1
= control target key start
LH: loop header
LB: loop body
LE: loop exit
PB: predicated region body
PF: predicated region fallthrough
CT: control target
= control target key end

     0   :  { %s948_s0 = inlined_call_operand.vmem [shape: bf16[32,8], index: 0, kind: input, shape index: {}]   ;;  %s949_s1 = inlined_call_operand.vmem [shape: bf16[8,32], index: 1, kind: input, shape index: {}]   ;;  %s950_s2 = inlined_call_operand.vmem [shape: f32[1,32], index: 2, kind: input, shape index: {}]   ;;  %s951_s3 = inlined_call_operand.vmem [shape: bf16[32,32], index: 3, kind: input, shape index: {}]   ;;  %s952_s4 = inlined_call_operand.vmem [shape: f32[1,32], index: 4, kind: input, shape index: {}]   ;;  %s953_s5 = inlined_call_operand.vmem [shape: bf16[32,32], index: 5, kind: input, shape index: {}]   ;;  %s954_s6 = inlined_call_operand.vmem [shape: f32[1,32], index: 6, kind: input, shape index: {}]   ;;  %s955_s7 = inlined_call_operand.hbm [shape: bf16[1,32], index: 7, kind: input, shape index: {}]   ;;  %s956_s8 = inlined_call_operand.<no memory space> [shape: f32[1,1], index: 8, kind: input, shape index: {}]   ;;  %s957_s9 = inlined_call_operand.vmem [shape: f32[2,1,16], index: 9, kind: output, shape index: {}]  }
   0x1   :  { %v14_v0 = vstv %s956_s8 }
   0x2   :  { %15 = vst [vmem:[#allocation2] sm:$0x1] %v14_v0 }
   0x3   :  { %16 = vsyncpa [#allocation4], 0  ;;  %s859_s11 = smov 0  }
   0x4 LB: > { %s865_s12 = sadd.s32 4294967295, %s800_s11   ;;  %p675_p0 = scmp.ge.s32.totalorder %s800_s11, 1  ;;  %s800_s11 = sphi %s859_s11, %s22_s11  }
   0x5   : > { %p247_p1 = scmp.lt.s32.totalorder %s800_s11, 3  ;;  %p958_p3 = scmp.eq.s32.totalorder %s865_s12, 0 }
   0x6   : > { %s802_s13 = smov [#allocation3]   ;;  %s762_s18 = scalar_lea.hbm %s955_s7, 16 }
   0x7   : > { %p869_p2 = pnand %p675_p0, %p247_p1  ;;  %s278_s14 = sshll.u32 %s802_s13, 4  ;;  %s279_s14 = int_to_ptr.vmem [resolvable:$true] %s278_s14 }
   0x8   : > { %p763_p6 = scmp.ne.s32.totalorder %s955_s7, %s762_s18  ;;  %p769_p10 = scmp.lt.u32.totalorder %s762_s18, %s955_s7 }
   0x9   : > { %s960_s8 = scalar_select %p869_p2, 1, 0 }
   0xa   : > { %p738_p4 = pneg %p869_p2 }
   0xc   : > { %p878_p5 = pnand %p958_p3, %p738_p4 }
   0xe   : > { %p764_p7 = pneg %p878_p5 }
  0x10   : > { %p765_p8 = pnand %p764_p7, %p763_p6 }
  0x12   : > { %p766_p9 = pneg %p765_p8 }
  0x14   : > { %p771_p11 = pnand %p769_p10, %p766_p9 }
  0x16   : > { %774 = shalt.err (!%p771_p11)
}
  0x17   : > { %s775_s23 = scalar_lea.vmem %s279_s14, 16  ;;  %s782_s24 = scalar_lea.vmem %s279_s14, 32 }
  0x18   : > { %p776_p12 = scmp.ne.s32.totalorder %s279_s14, %s775_s23  ;;  %p783_p1 = scmp.lt.s32.totalorder %s279_s14, %s279_s14 }
  0x19   : > { %p784_p4 = scmp.lt.s32.totalorder %s782_s24, %s775_s23 }
  0x1a   : > { %p778_p13 = pnand %p776_p12, %p764_p7 }
  0x1b   : > { %p785_p3 = por %p784_p4, %p783_p1 }
  0x1c   : > { %p779_p0 = pneg %p778_p13 }
  0x1e   : > { %p786_p2 = pnand %p785_p3, %p779_p0 }
  0x20   : > { %789 = shalt.err (!%p786_p2)
}
  0x21   : > { %741 = dma.hbm_to_vmem [thread:$0]  (!%p878_p5), %s955_s7, 16, %s279_s14, [#allocation4]  }
  0x22   : > { %p962_p6 = scmp.ne.s32.totalorder %s960_s8, 0 }
  0x23   : > { %p963_p8 = scmp.eq.s32.totalorder (!%p962_p6), %s865_s12, 0 }
  0x24   : > { %303 = sbr.rel (%p962_p6) target bundleno = 934 (0x3a6), region = 56 }
  0x2b   : > { %795 = dma.done.wait (%p963_p8), [#allocation4], 16   ;;  %p964_p7 = pmov %p963_p8 }
  0x2c   : > { %s680_s27 = sshll.u32 %s865_s12, 1  ;;  %v803_v1 = vmov 0.0   ;;  %vm804_vm0 = vmmov 0   ;;  %vm366_vm1 = vcmask 1043456   ;;  %v349_v2 = vld [vmem:[%s949_s1] sm:$0xf]  ;;  %v562_v43 = vlaneseq }
  0x2d   : > { %797 = vsyncadd (%p964_p7), [#allocation4], 4294967280  ;;  %706 = vmatprep.subr.bf16.mxu0 %v803_v1  ;;  %708 = vmatprep.mubr.msk.bf16.mxu0 %vm804_vm0, %v803_v1  ;;  %p338_p2 = scmp.lt.s32.totalorder %s680_s27, 3  ;;  %v368_v3 = vsel %vm366_vm1, %v349_v2, 0  ;;  %vm362_vm2 = vcmask 64512   ;;  %v758_v5 = vld [vmem:[%s951_s3] sm:$0xff]  }
  0x2e   : > { %712 = vmatprep.subr.bf16.mxu1 %v803_v1  ;;  %716 = vmatprep.mubr.msk.bf16.mxu1 %vm804_vm0, %v803_v1  ;;  %v759_v6 = vld [vmem:[%s951_s3 + $0x8] sm:$0xff]   ;;  %v682_v7 = vld [vmem:[%s950_s2] ss:$0 sm:$0xff]  ;;  %vm437_vm3 = vcmask 261120   ;;  %v805_v30 = vmov 0   ;;  %v563_v44 = vshrl.u32 %v562_v43, 7 }
  0x2f   : > { %s966_s27 = smov (!%p338_p2, %s680_s27), 3  ;;  %707 = vmatpush3.bf16.msra.mxu0 %v368_v3  ;;  %713 = vmatpush3.bf16.msra.mxu1 %v758_v5  ;;  %v760_v17 = vld [vmem:[%s953_s5] sm:$0xff]   ;;  %v761_v18 = vld [vmem:[%s953_s5 + $0x8] sm:$0xff]   ;;  %p343_p3 = scmp.lt.s32.totalorder %s865_s12, 1  ;;  %vm612_vm4 = vcmask 122880  }
  0x30   : > { %s681_s28 = sshll.u32 %s966_s27, 2  ;;  %720 = vmatprep.subr.bf16.mxu0 %v803_v1  ;;  %714 = vmatprep.subr.bf16.mxu1 %v803_v1  ;;  %v685_v19 = vld [vmem:[%s952_s4] ss:$0 sm:$0xff]  ;;  %v554_v42 = vld [vmem:[#allocation3] sm:$0x1]  ;;  %v564_v45 = vsub.s32 0, %v563_v44 }
  0x31   : > { %s341_s10 = scalar_lea.vmem %s948_s0, %s681_s28  ;;  %v556_v29 = vld [vmem:[#allocation2] sm:$0x1]  ;;  %756 = vset.pattern.permute.xlu0 %v805_v30  ;;  %s968_s12 = smov (!%p343_p3, %s865_s12), 1 }
  0x32   : > { %v757_v4 = vld [vmem:[%s341_s10] sm:$0xff]   ;;  %559 = vperm.xlu0 %756, %v556_v29   ;;  %s345_s30 = scalar_lea.vmem %s957_s9, %s968_s12 }
  0x33   : > { %709 = vmatmul.mubr.msk.bf16.vlgmr.msra.gmra.mrb[0].mxu0 %vm362_vm2, %v757_v4  ;;  %715 = vmatpush3.bf16.msra.mxu1 %v759_v6  ;;  %v689_v31 = vld [vmem:[%s954_s6] ss:$0 sm:$0xff] }
  0x34   : > { %724 = vmatprep.mubr.msk.bf16.mxu0 %vm804_vm0, %v803_v1  ;;  %728 = vmatprep.subr.bf16.mxu1 %v803_v1 }
  0x35   : > { %721 = vmatpush3.bf16.msra.mxu0 %v760_v17 }
  0x36   : > { %722 = vmatprep.subr.bf16.mxu0 %v803_v1 }
  0x39   : > { %723 = vmatpush3.bf16.msra.mxu0 %v761_v18 }
  0xb1   : > { %v560_v46 = vpop.permute.xlu0 %559 }
  0xb2   : > { %v565_v47 = vrot.slane %v560_v46, %v564_v45 }
 0x106   : > { %v404_v8 = vpop.f32.mrb[0].mxu0 }
 0x107   : > { %v405_v9 = vadd.f32 %v682_v7, %v404_v8  ;;  %v710_v10 = vpop.f32.mrb[1].mxu0 }
 0x108   : > { %v407_v11 = vpop.f32.mrb[2].mxu0 }
 0x109   : > { %v408_v12 = vadd.f32 %v682_v7, %v407_v11  ;;  %v711_v13 = vpop.f32.mrb[3].mxu0  ;;  %v411_v14 = vmax.f32 %v405_v9, 0.0 }
 0x10b   : > { %v412_v15 = vmax.f32 %v408_v12, 0.0 }
 0x10d   : > { %v413_v16 = vpack.c.bf16 %v412_v15, %v411_v14 }
 0x10f   : > { %717 = vmatmul.mubr.msk.bf16.vlgmr.msra.gmra.mrb[0].mxu1 %vm437_vm3, %v413_v16 }
 0x110   : > { %730 = vmatprep.mubr.msk.bf16.mxu1 %vm804_vm0, %v803_v1 }
 0x1e2   : > { %v475_v20 = vpop.f32.mrb[0].mxu1 }
 0x1e3   : > { %v476_v21 = vadd.f32 %v685_v19, %v475_v20  ;;  %v718_v22 = vpop.f32.mrb[1].mxu1 }
 0x1e4   : > { %v478_v23 = vpop.f32.mrb[2].mxu1 }
 0x1e5   : > { %v479_v24 = vadd.f32 %v685_v19, %v478_v23  ;;  %v719_v25 = vpop.f32.mrb[3].mxu1  ;;  %v482_v26 = vmax.f32 %v476_v21, 0.0 }
 0x1e7   : > { %v483_v27 = vmax.f32 %v479_v24, 0.0 }
 0x1e9   : > { %v484_v28 = vpack.c.bf16 %v483_v27, %v482_v26 }
 0x1eb   : > { %725 = vmatmul.mubr.msk.bf16.vlgmr.msra.gmra.mrb[4].mxu0 %vm437_vm3, %v484_v28 }
 0x2be   : > { %v545_v32 = vpop.f32.mrb[4].mxu0 }
 0x2bf   : > { %v546_v33 = vadd.f32 %v689_v31, %v545_v32  ;;  %v726_v34 = vpop.f32.mrb[5].mxu0 }
 0x2c0   : > { %v548_v35 = vpop.f32.mrb[6].mxu0 }
 0x2c1   : > { %v549_v36 = vadd.f32 %v689_v31, %v548_v35  ;;  %v727_v37 = vpop.f32.mrb[7].mxu0  ;;  %v552_v38 = vmax.f32 %v546_v33, 0.0 }
 0x2c3   : > { %v553_v39 = vmax.f32 %v549_v36, 0.0 }
 0x2c5   : > { %v555_v40 = vpack.c.bf16 %v553_v39, %v552_v38 }
 0x2c7   : > { %v570_v41 = vsel %vm437_vm3, %v555_v40, 0 }
 0x2c8   : > { %729 = vmatpush3.bf16.xpose.msra.mxu1 %v570_v41 }
 0x2cf   : > { %731 = vmatmul.mubr.msk.bf16.vlgmr.msra.gmra.mrb[4].mxu1 %vm437_vm3, %v554_v42 }
 0x3a2   : > { %v606_v48 = vpop.f32.mrb[4].mxu1 }
 0x3a3   : > { %v607_v49 = vadd.f32 %v606_v48, %v565_v47  ;;  %v732_v50 = vpop.f32.mrb[5].mxu1 }
 0x3a4   : > { %v609_v51 = vpop.f32.mrb[6].mxu1 }
 0x3a5   : > { %613 = vst.msk [vmem:[%s345_s30] sm:$0x1] %vm612_vm4, %v607_v49  ;;  %v733_v52 = vpop.f32.mrb[7].mxu1 }
 0x3a6 PF: > { %s22_s11 = sadd.s32 1, %s800_s11  }
 0x3a7   : > { %p19_p5 = scmp.ge.s32.totalorder %s22_s11, 4  }
 0x3a9   :  { %21 = sbr.rel (!%p19_p5) target bundleno = 4 (0x4), region = 91 }
 0x3b0   :  { %631 = vsyncpa [#allocation4], 1 }
 0x3b1   :  { %633 = vsyncpa [#allocation4 + $0x1], 1 }

</bundles_post_ra>
